<compile_context>
chip_gen: v7x
topology: tpu7x:2x2x1
jax: 0.10.0
libtpu: 0.0.40
codegen_flags: <defaults>
</compile_context>

<pallas_src>
import numpy as np
import jax
import jax.numpy as jnp
from jax import lax
from jax.experimental import pallas as pl
from jax.experimental.pallas import tpu as pltpu

LANE = 128


def _round_up(a, b):
    return (a + b - 1) // b * b


def _device_config():
    """Per-TPU-generation tile sizes and exp dtype (safe fallback if unknown)."""
    try:
        kind = jax.devices()[0].device_kind.lower()
    except Exception:
        kind = ""
    if "v5" in kind:                      # 128-wide MXU, no bf16 EUP
        return 256, 256, jnp.float32
    if "v6" in kind or "v7" in kind:      # 256-wide MXU, bf16 EUP
        return 256, 512, jnp.bfloat16
    return 128, 256, jnp.float32


def _fit_tiles(n, tq, tk):
    """Clamp tiles for small graphs; keep tq | tk and both multiples of 128."""
    nr = _round_up(n, LANE)
    tk = min(tk, nr)
    tq = min(tq, tk)
    while tk % tq != 0:
        tq -= LANE
    np_pad = _round_up(n, tk)             # divisible by tk, hence also by tq
    return tq, tk, np_pad


# --------------------------------------------------------------------------
# lin1: h = x @ W + b (bf16 MXU, f32 accumulate), plus precomputed L2 norm.
# Emits h in bf16 with a ones-column at index h_valid (folds the softmax
# row-sum into the MXU of the following propagation) and hn = normalize(h).
# --------------------------------------------------------------------------
def make_lin1_kernel(h_valid):
    def kernel(x_ref, w_ref, b_ref, h_ref, hn_ref):
        xb = x_ref[...].astype(jnp.bfloat16)
        wb = w_ref[...].astype(jnp.bfloat16)
        h = jnp.dot(xb, wb, preferred_element_type=jnp.float32) + b_ref[...]
        # F.normalize(h, p=2, dim=-1), eps=1e-12 -> rsqrt of clamped sq-norm
        ss = jnp.maximum(jnp.sum(h * h, axis=-1, keepdims=True), 1e-24)
        hn_ref[...] = (h * lax.rsqrt(ss)).astype(jnp.bfloat16)
        col = lax.broadcasted_iota(jnp.int32, h.shape, 1)
        ones_col = (col == h_valid).astype(jnp.float32)   # padded col -> 1.0
        h_ref[...] = (h + ones_col).astype(jnp.bfloat16)
    return kernel


# --------------------------------------------------------------------------
# AGNN propagation: block-sparse masked softmax with a fixed |beta| shift.
# Grid (query_block, active_key_step); key steps iterate only over key blocks
# that contain edges for this query block (scalar-prefetched id list).
# --------------------------------------------------------------------------
def make_prop_kernel(beta_index, h_valid, emit_logits, exp_dtype):
    def kernel(cnt_ref, kbid_ref, betas_ref, hnq_ref, hnk_ref, hk_ref, adj_ref,
               *rest):
        del kbid_ref                       # only used inside index_maps
        acc_sc = rest[-1]
        i = pl.program_id(0)
        k = pl.program_id(1)

        @pl.when(k == 0)
        def _init():
            acc_sc[...] = jnp.zeros_like(acc_sc)

        @pl.when(k < cnt_ref[i])           # skip padded (inactive) key steps
        def _step():
            beta = betas_ref[beta_index]                       # f32 scalar
            # cosine similarities on the MXU; beta folded into the q operand
            q = hnq_ref[...] * beta.astype(jnp.bfloat16)       # (tq, Hp) bf16
            s = lax.dot_general(q, hnk_ref[...],
                                (((1,), (1,)), ((), ())),
                                preferred_element_type=jnp.float32)
            # fixed-shift softmax numerator: logits bounded by |beta|, so no
            # running max / rescale is needed; masked entries -> exp(-1e30) = 0
            adjm = (adj_ref[...].astype(jnp.float32) - 1.0) * 1e30
            s = s - jnp.abs(beta) + adjm
            p = jnp.exp(s.astype(exp_dtype))
            acc_sc[...] += jnp.dot(p.astype(jnp.bfloat16), hk_ref[...],
                                   preferred_element_type=jnp.float32)

        @pl.when(k == pl.num_programs(1) - 1)
        def _finalize():
            acc = acc_sc[...]
            col = lax.broadcasted_iota(jnp.int32, acc.shape, 1)
            ones_col = (col == h_valid).astype(jnp.float32)
            validf = (col < h_valid).astype(jnp.float32)
            # softmax denominator came for free out of the MXU (ones column)
            l = jnp.sum(acc * ones_col, axis=-1, keepdims=True)
            out = acc * pl.reciprocal(l, approx=True)
            if emit_logits:
                (out_ref,) = rest[:-1]
                # fused log_softmax(dim=1) over the h_valid real columns
                zm = out + (validf - 1.0) * 1e30
                m = jnp.max(zm, axis=-1, keepdims=True)
                e = jnp.exp((out - m) * validf) * validf
                lse = jnp.log(jnp.sum(e, axis=-1, keepdims=True))
                out_ref[...] = (out - m - lse).astype(out_ref.dtype)
            else:
                h_ref, hn_ref = rest[:-1]
                outv = out * validf                    # drop ones/padded cols
                ss = jnp.maximum(jnp.sum(outv * outv, axis=-1, keepdims=True),
                                 1e-24)
                hn_ref[...] = (outv * lax.rsqrt(ss)).astype(jnp.bfloat16)
                h_ref[...] = (outv + ones_col).astype(jnp.bfloat16)
    return kernel


# --------------------------------------------------------------------------
# Wrapper: pad to lane-dense shapes, run lin1 + prop1 + prop2(+log_softmax)
# --------------------------------------------------------------------------
def agnn_forward(x, w1, b1, adj, betas, *, tq=None, tk=None):
    """x: (N, F); w1: (F, H); b1: (1, H) or (H,); adj: dense (N, N) 0/1 mask
    with adj[i, j] = 1 iff edge j -> i (self-loops included); betas: (2,)."""
    x = jnp.asarray(x, jnp.float32)
    w1 = jnp.asarray(w1, jnp.float32)
    b1 = jnp.asarray(b1, jnp.float32).reshape(1, -1)
    betas = jnp.asarray(betas, jnp.float32).reshape(2)
    adj_np = np.asarray(adj, np.float32)

    N, F = x.shape
    H = w1.shape[1]
    dtq, dtk, exp_dtype = _device_config()
    tq = dtq if tq is None else tq
    tk = dtk if tk is None else tk
    tq, tk, Np = _fit_tiles(N, tq, tk)

    Fp = _round_up(F, LANE)
    Hp = _round_up(H + 1, LANE)   # >= 1 spare column carries the softmax row-sum

    # F.dropout(x, training=False) is the identity in eval mode.
    # TODO(synk): a training-mode kernel would need pltpu.prng_random_bits masking.
    x_p = jnp.zeros((Np, Fp), jnp.float32).at[:N, :F].set(x)
    w_p = jnp.zeros((Fp, Hp), jnp.float32).at[:F, :H].set(w1)
    b_p = jnp.zeros((1, Hp), jnp.float32).at[:, :H].set(b1)

    # Dense adjacency as int8 (4x smaller HBM stream than f32). Self-loops on
    # padded rows keep their softmax denominators nonzero (no NaN poisoning of
    # later key operands); padded rows are sliced off at the end anyway.
    # TODO(synk): for very large N, build compacted per-block tiles straight
    # from edge_index instead of a dense Np x Np array.
    adj_full = np.zeros((Np, Np), np.int8)
    adj_full[:N, :N] = (adj_np > 0).astype(np.int8)
    if Np > N:
        pad_ids = np.arange(N, Np)
        adj_full[pad_ids, pad_ids] = 1
    adj_p = jnp.asarray(adj_full)

    # Block-sparsity metadata (scalar prefetch): per query block, the compacted
    # list of key blocks containing at least one edge (diagonal always active).
    nqb, nkb = Np // tq, Np // tk
    blk = adj_full.reshape(nqb, tq, nkb, tk).any(axis=(1, 3))   # (nqb, nkb)
    counts_np = blk.sum(axis=1).astype(np.int32)                # each >= 1
    max_kb = int(counts_np.max())
    kbid_np = np.zeros((nqb, max_kb), np.int32)
    for qi in range(nqb):
        ids = np.nonzero(blk[qi])[0].astype(np.int32)
        kbid_np[qi, :len(ids)] = ids
        kbid_np[qi, len(ids):] = ids[-1]    # repeat last id -> no extra DMA
    counts = jnp.asarray(counts_np)
    kbid = jnp.asarray(kbid_np)

    # ---- lin1 (+ precomputed L2 normalization, both emitted in bf16) ----
    h, hn = pl.pallas_call(
        make_lin1_kernel(H),
        out_shape=(jax.ShapeDtypeStruct((Np, Hp), jnp.bfloat16),
                   jax.ShapeDtypeStruct((Np, Hp), jnp.bfloat16)),
        grid_spec=pltpu.PrefetchScalarGridSpec(
            num_scalar_prefetch=0,
            grid=(Np // tq,),
            in_specs=[pl.BlockSpec((tq, Fp), lambda i: (i, 0)),
                      pl.BlockSpec((Fp, Hp), lambda i: (0, 0)),
                      pl.BlockSpec((1, Hp), lambda i: (0, 0))],
            out_specs=(pl.BlockSpec((tq, Hp), lambda i: (i, 0)),
                       pl.BlockSpec((tq, Hp), lambda i: (i, 0)))),
        compiler_params=pltpu.CompilerParams(
            dimension_semantics=("parallel",)),
    )(x_p, w_p, b_p)

    active = int(blk.sum())
    cost = pl.CostEstimate(
        flops=active * 4 * tq * tk * Hp,                       # two MXU matmuls
        transcendentals=active * tq * tk,                      # exp per score
        bytes_accessed=active * (tq * tk + 4 * tk * Hp)        # adj + hnk + hk
        + nqb * 10 * tq * Hp)                                  # hnq + outputs

    def prop(h_in, hn_in, beta_index, emit_logits):
        kernel = make_prop_kernel(beta_index, H, emit_logits, exp_dtype)
        if emit_logits:
            out_shape = jax.ShapeDtypeStruct((Np, Hp), jnp.float32)
            out_specs = pl.BlockSpec((tq, Hp), lambda i, k, c, kb, b: (i, 0))
        else:
            out_shape = (jax.ShapeDtypeStruct((Np, Hp), jnp.bfloat16),
                         jax.ShapeDtypeStruct((Np, Hp), jnp.bfloat16))
            out_specs = (pl.BlockSpec((tq, Hp), lambda i, k, c, kb, b: (i, 0)),
                         pl.BlockSpec((tq, Hp), lambda i, k, c, kb, b: (i, 0)))
        return pl.pallas_call(
            kernel,
            out_shape=out_shape,
            grid_spec=pltpu.PrefetchScalarGridSpec(
                num_scalar_prefetch=3,                 # counts, kbid, betas
                grid=(nqb, max_kb),
                in_specs=[
                    pl.BlockSpec((tq, Hp), lambda i, k, c, kb, b: (i, 0)),        # hn (query)
                    pl.BlockSpec((tk, Hp), lambda i, k, c, kb, b: (kb[i, k], 0)), # hn (key)
                    pl.BlockSpec((tk, Hp), lambda i, k, c, kb, b: (kb[i, k], 0)), # h  (value)
                    pl.BlockSpec((tq, tk), lambda i, k, c, kb, b: (i, kb[i, k])), # adj tile
                ],
                out_specs=out_specs,
                scratch_shapes=[pltpu.VMEM((tq, Hp), jnp.float32)]),   # accumulator
            compiler_params=pltpu.CompilerParams(
                dimension_semantics=("parallel", "arbitrary")),
            cost_estimate=cost,
        )(counts, kbid, betas, hn_in, hn_in, h_in, adj_p)

    h1, hn1 = prop(h, hn, 0, emit_logits=False)    # prop1
    logp = prop(h1, hn1, 1, emit_logits=True)      # prop2 + fused log_softmax(dim=1)
    # self.layers is reset to an empty ModuleList in __init__ -> nothing else.
    return logp[:N, :H]


# --------------------------------------------------------------------------
# Pure-JAX reference of the same forward pass (f32, unpadded)
# --------------------------------------------------------------------------
def ref_forward(x, w1, b1, adj, betas):
    h = x @ w1 + b1

    def prop(h, beta):
        hn = h / jnp.maximum(jnp.linalg.norm(h, axis=-1, keepdims=True), 1e-12)
        s = beta * (hn @ hn.T)
        s = jnp.where(adj > 0, s, -jnp.inf)
        alpha = jax.nn.softmax(s, axis=-1)
        return alpha @ h

    h = prop(h, betas[0])
    h = prop(h, betas[1])
    return jax.nn.log_softmax(h, axis=1)


if __name__ == "__main__":
    # Small deterministic setup: N=8 nodes, num_features=16, width=[32]
    # (num_classes is unused because self.layers ends up empty).
    N, F, H = 8, 16, 32
    key = jax.random.PRNGKey(0)
    k1, k2, k3 = jax.random.split(key, 3)

    x = jax.random.normal(k1, (N, F), jnp.float32)

    # torch.nn.Linear init: U(-1/sqrt(fan_in), 1/sqrt(fan_in))
    bound = 1.0 / np.sqrt(F)
    w1 = jax.random.uniform(k2, (F, H), jnp.float32, -bound, bound)
    b1 = jax.random.uniform(k3, (1, H), jnp.float32, -bound, bound)

    # Deterministic graph: bidirectional ring on N nodes, edge_index shape (2, 2N)
    src = np.concatenate([np.arange(N), (np.arange(N) + 1) % N])
    dst = np.concatenate([(np.arange(N) + 1) % N, np.arange(N)])
    adj = np.zeros((N, N), np.float32)
    adj[dst, src] = 1.0                       # edge j -> i
    adj[np.arange(N), np.arange(N)] = 1.0     # AGNNConv add_self_loops=True
    adj = jnp.asarray(adj)

    # AGNNConv(requires_grad=True) initializes beta = 1.0
    betas = jnp.ones((2,), jnp.float32)

    out = agnn_forward(x, w1, b1, adj, betas)
    jax.block_until_ready(out)

    ref = ref_forward(x, w1, b1, adj, betas)
    assert out.shape == (N, H)
    # bf16 MXU operands / bf16 inter-stage storage + approx reciprocal ->
    # looser tolerance vs the f32 reference
    err = np.max(np.abs(np.asarray(out) - np.asarray(ref)))
    assert np.allclose(np.asarray(out), np.asarray(ref), atol=5e-2, rtol=5e-2), err

    print("KERNEL_OK")
</pallas_src>

<mosaic_0001>
module attributes {stable_mosaic.version = 11 : i64} {
  func.func @kernel(%arg0: i32, %arg1: memref<128x128xf32, #tpu.memory_space<vmem>>, %arg2: memref<128x128xf32, #tpu.memory_space<vmem>>, %arg3: memref<1x128xf32, #tpu.memory_space<vmem>>, %arg4: memref<128x128xbf16, #tpu.memory_space<vmem>>, %arg5: memref<128x128xbf16, #tpu.memory_space<vmem>>) attributes {dimension_semantics = [#tpu.dimension_semantics<parallel>], iteration_bounds = array<i64: 1>, scalar_prefetch = 0 : i64, scratch_operands = 0 : i64, tpu.core_type = #tpu.core_type<tc>, window_params = [{transform_indices = @transform_0, window_bounds = array<i64: 128, 128>}, {pipeline_mode = #tpu.pipeline_mode<synchronous>, transform_indices = @transform_1, window_bounds = array<i64: 128, 128>}, {pipeline_mode = #tpu.pipeline_mode<synchronous>, transform_indices = @transform_2, window_bounds = array<i64: 1, 128>}, {transform_indices = @transform_3, window_bounds = array<i64: 128, 128>}, {transform_indices = @transform_4, window_bounds = array<i64: 128, 128>}]} {
    %c0 = arith.constant 0 : index
    %c0_0 = arith.constant 0 : index
    %0 = vector.load %arg1[%c0, %c0_0] : memref<128x128xf32, #tpu.memory_space<vmem>>, vector<128x128xf32>
    %1 = arith.truncf %0 : vector<128x128xf32> to vector<128x128xbf16>
    %c0_1 = arith.constant 0 : index
    %c0_2 = arith.constant 0 : index
    %2 = vector.load %arg2[%c0_1, %c0_2] : memref<128x128xf32, #tpu.memory_space<vmem>>, vector<128x128xf32>
    %3 = arith.truncf %2 : vector<128x128xf32> to vector<128x128xbf16>
    %cst = arith.constant dense<0.000000e+00> : vector<128x128xf32>
    %4 = tpu.matmul %1, %3, %cst {dimension_numbers = #tpu.dot_dimension_numbers<[1], [0], [0], [1], [0, 0, 1, 1], [], []>} : vector<128x128xbf16>, vector<128x128xbf16>, vector<128x128xf32> -> vector<128x128xf32>
    %c0_3 = arith.constant 0 : index
    %c0_4 = arith.constant 0 : index
    %5 = vector.load %arg3[%c0_3, %c0_4] : memref<1x128xf32, #tpu.memory_space<vmem>>, vector<1x128xf32>
    %6 = vector.broadcast %5 : vector<1x128xf32> to vector<128x128xf32>
    %7 = arith.addf %4, %6 : vector<128x128xf32>
    %8 = arith.mulf %7, %7 : vector<128x128xf32>
    %cst_5 = arith.constant dense<0.000000e+00> : vector<128xf32>
    %9 = vector.multi_reduction <add>, %8, %cst_5 [1] : vector<128x128xf32> to vector<128xf32>
    %10 = vector.shape_cast %9 : vector<128xf32> to vector<128x1xf32>
    %cst_6 = arith.constant 1.000000e-24 : f32
    %11 = vector.broadcast %cst_6 : f32 to vector<128x1xf32>
    %12 = arith.maximumf %10, %11 : vector<128x1xf32>
    %13 = math.rsqrt %12 : vector<128x1xf32>
    %14 = vector.broadcast %13 : vector<128x1xf32> to vector<128x128xf32>
    %15 = arith.mulf %7, %14 : vector<128x128xf32>
    %16 = arith.truncf %15 : vector<128x128xf32> to vector<128x128xbf16>
    %c0_7 = arith.constant 0 : index
    %c0_8 = arith.constant 0 : index
    %17 = vector.load %arg5[%c0_7, %c0_8] : memref<128x128xbf16, #tpu.memory_space<vmem>>, vector<128x128xbf16>
    tpu.vector_store %arg5[%c0_7, %c0_8], %16 {strides = array<i32>} : memref<128x128xbf16, #tpu.memory_space<vmem>>, vector<128x128xbf16>,
    %18 = tpu.iota {dimensions = array<i32: 1>} : vector<128x128xi32>
    %c32_i32 = arith.constant 32 : i32
    %19 = vector.broadcast %c32_i32 : i32 to vector<128x128xi32>
    %20 = arith.cmpi eq, %18, %19 : vector<128x128xi32>
    %21 = arith.extui %20 : vector<128x128xi1> to vector<128x128xi32>
    %22 = arith.sitofp %21 : vector<128x128xi32> to vector<128x128xf32>
    %23 = arith.addf %7, %22 : vector<128x128xf32>
    %24 = arith.truncf %23 : vector<128x128xf32> to vector<128x128xbf16>
    %c0_9 = arith.constant 0 : index
    %c0_10 = arith.constant 0 : index
    %25 = vector.load %arg4[%c0_9, %c0_10] : memref<128x128xbf16, #tpu.memory_space<vmem>>, vector<128x128xbf16>
    tpu.vector_store %arg4[%c0_9, %c0_10], %24 {strides = array<i32>} : memref<128x128xbf16, #tpu.memory_space<vmem>>, vector<128x128xbf16>,
    return
  }
  func.func @transform_0(%arg0: i32) -> (i32, i32) {
    %c0_i32 = arith.constant 0 : i32
    %c0_i32_0 = arith.constant 0 : i32
    return %arg0, %c0_i32 : i32, i32
  }
  func.func @transform_1(%arg0: i32) -> (i32, i32) {
    %c0_i32 = arith.constant 0 : i32
    %c0_i32_0 = arith.constant 0 : i32
    %c0_i32_1 = arith.constant 0 : i32
    return %c0_i32, %c0_i32_0 : i32, i32
  }
  func.func @transform_2(%arg0: i32) -> (i32, i32) {
    %c0_i32 = arith.constant 0 : i32
    %c0_i32_0 = arith.constant 0 : i32
    %c0_i32_1 = arith.constant 0 : i32
    return %c0_i32, %c0_i32_0 : i32, i32
  }
  func.func @transform_3(%arg0: i32) -> (i32, i32) {
    %c0_i32 = arith.constant 0 : i32
    %c0_i32_0 = arith.constant 0 : i32
    return %arg0, %c0_i32 : i32, i32
  }
  func.func @transform_4(%arg0: i32) -> (i32, i32) {
    %c0_i32 = arith.constant 0 : i32
    %c0_i32_0 = arith.constant 0 : i32
    return %arg0, %c0_i32 : i32, i32
  }
}

</mosaic_0001>

<bundles_post_ra>
// kernel: tpu_custom_call.1
= control target key start
LH: loop header
LB: loop body
LE: loop exit
PB: predicated region body
PF: predicated region fallthrough
CT: control target
= control target key end

     0   :  { %10 = vsyncpa [#allocation3], 0  ;;  %s1094_s0 = inlined_call_operand.hbm [shape: f32[128,128], index: 0, kind: input, shape index: {}]   ;;  %s1095_s1 = inlined_call_operand.hbm [shape: f32[128,128], index: 1, kind: input, shape index: {}]   ;;  %s1096_s2 = inlined_call_operand.vmem [shape: f32[1,128], index: 2, kind: input, shape index: {}]   ;;  %s1097_s3 = inlined_call_operand.hbm [shape: bf16[128,128], index: 3, kind: output, shape index: {0}]   ;;  %s1098_s4 = inlined_call_operand.hbm [shape: bf16[128,128], index: 4, kind: output, shape index: {1}]  }
   0x1   :  { %11 = vsyncpa [#allocation6], 0 }
   0x2   :  { %12 = vsyncpa [#allocation4], 0 }
   0x3   :  { %13 = vsyncpa [#allocation9], 0  ;;  %s871_s15 = smov [#allocation2]   ;;  %s775_s19 = scalar_lea.hbm %s1094_s0, 2048 }
   0x4   :  { %s19_s16 = sshll.u32 %s871_s15, 4  ;;  %p776_p0 = scmp.ne.s32.totalorder %s1094_s0, %s775_s19  ;;  %s20_s16 = int_to_ptr.vmem [resolvable:$true] %s19_s16 }
   0x5   :  { %p779_p1 = scmp.lt.u32.totalorder %s775_s19, %s1094_s0 }
   0x7   :  { %p781_p2 = pnand %p779_p1, %p776_p0 }
   0x9   :  { %784 = shalt.err (!%p781_p2)
}
   0xa   :  { %s785_s24 = scalar_lea.vmem %s20_s16, 2048  ;;  %p790_p4 = scmp.lt.s32.totalorder %s20_s16, %s20_s16 }
   0xb   :  { %p786_p3 = scmp.ne.s32.totalorder %s20_s16, %s785_s24  ;;  %p791_p5 = scmp.lt.s32.totalorder %s785_s24, %s785_s24 }
   0xd   :  { %p792_p6 = por %p791_p5, %p790_p4 }
   0xf   :  { %p793_p7 = pnand %p792_p6, %p786_p3 }
  0x11   :  { %796 = shalt.err (!%p793_p7)
}
  0x12   :  { %s872_s25 = smov 128   ;;  %s873_s26 = smov 8  }
  0x13   :  { %25 = dma.hbm_to_vmem [thread:$0]  %s1094_s0, 2048, %s20_s16, [#allocation3], %s872_s25, %s872_s25, %s873_s26  }
  0x14   :  { %s874_s29 = smov [#allocation5]   ;;  %s797_s7 = scalar_lea.hbm %s1095_s1, 2048 }
  0x15   :  { %s31_s30 = sshll.u32 %s874_s29, 4  ;;  %p798_p8 = scmp.ne.s32.totalorder %s1095_s1, %s797_s7  ;;  %s32_s30 = int_to_ptr.vmem [resolvable:$true] %s31_s30 }
  0x16   :  { %p801_p9 = scmp.lt.u32.totalorder %s797_s7, %s1095_s1 }
  0x18   :  { %p803_p10 = pnand %p801_p9, %p798_p8 }
  0x1a   :  { %806 = shalt.err (!%p803_p10)
}
  0x1b   :  { %s807_s12 = scalar_lea.vmem %s32_s30, 2048  ;;  %p812_p12 = scmp.lt.s32.totalorder %s32_s30, %s32_s30 }
  0x1c   :  { %p808_p11 = scmp.ne.s32.totalorder %s32_s30, %s807_s12  ;;  %p813_p13 = scmp.lt.s32.totalorder %s807_s12, %s807_s12 }
  0x1e   :  { %p814_p0 = por %p813_p13, %p812_p12 }
  0x20   :  { %p815_p1 = pnand %p814_p0, %p808_p11 }
  0x22   :  { %818 = shalt.err (!%p815_p1)
}
  0x23   :  { %37 = dma.hbm_to_vmem [thread:$0]  %s1095_s1, 2048, %s32_s30, [#allocation6], %s872_s25, %s872_s25, %s873_s26  }
  0x24   :  { %863 = dma.done.wait [#allocation3], 2048  }
  0x25   :  { %864 = vsyncadd [#allocation3], 4294965248 }
  0x26   :  { %865 = dma.done.wait [#allocation6], 2048  }
  0x27   :  { %866 = vsyncadd [#allocation6], 4294965248  ;;  %v71_v0 = vld [vmem:[#allocation5] sm:$0xff]  ;;  %v72_v1 = vld [vmem:[#allocation5 + $0x8] sm:$0xff]  ;;  %v375_v48 = vlaneseq  ;;  %v875_v54 = vmov 0.0  }
  0x28   :  { %v73_v2 = vld [vmem:[#allocation5 + $0x10] sm:$0xff]  ;;  %v87_v3 = vpack.c.bf16 %v72_v1, %v71_v0  ;;  %v74_v4 = vld [vmem:[#allocation5 + $0x18] sm:$0xff]  ;;  %v75_v6 = vld [vmem:[#allocation5 + $0x20] sm:$0xff] }
  0x29   :  { %v88_v5 = vpack.c.bf16 %v74_v4, %v73_v2  ;;  %v76_v7 = vld [vmem:[#allocation5 + $0x28] sm:$0xff]  ;;  %v77_v9 = vld [vmem:[#allocation5 + $0x30] sm:$0xff]  ;;  %v47_v10 = vld [vmem:[#allocation2] sm:$0xff]  ;;  %v376_v49 = vand.u32 127, %v375_v48 }
  0x2a   :  { %686 = vmatprep.subr.bf16.mxu0 %v87_v3  ;;  %718 = vmatprep.subr.bf16.mxu1 %v87_v3  ;;  %v89_v8 = vpack.c.bf16 %v76_v7, %v75_v6  ;;  %v48_v11 = vld [vmem:[#allocation2 + $0x8] sm:$0xff]  ;;  %v78_v12 = vld [vmem:[#allocation5 + $0x38] sm:$0xff]  ;;  %v55_v14 = vld [vmem:[#allocation2 + $0x40] sm:$0xff] }
  0x2b   :  { %687 = vmatpush3.bf16.msra.mxu0 %v87_v3  ;;  %726 = vmatpush3.bf16.msra.mxu1 %v87_v3  ;;  %v63_v13 = vpack.c.bf16 %v48_v11, %v47_v10  ;;  %v56_v15 = vld [vmem:[#allocation2 + $0x48] sm:$0xff]  ;;  %v90_v17 = vpack.c.bf16 %v78_v12, %v77_v9  ;;  %v79_v18 = vld [vmem:[#allocation5 + $0x40] sm:$0xff]  ;;  %v81_v21 = vld [vmem:[#allocation5 + $0x50] sm:$0xff]  ;;  %vm377_vm0 = vcmp.eq.s32.totalorder %v376_v49, 32 }
  0x2c   :  { %688 = vmatprep.subr.bf16.mxu0 %v88_v5  ;;  %719 = vmatprep.subr.bf16.mxu1 %v88_v5  ;;  %v67_v16 = vpack.c.bf16 %v56_v15, %v55_v14  ;;  %v80_v19 = vld [vmem:[#allocation5 + $0x48] sm:$0xff]  ;;  %v82_v22 = vld [vmem:[#allocation5 + $0x58] sm:$0xff]  ;;  %v83_v24 = vld [vmem:[#allocation5 + $0x60] sm:$0xff]  ;;  %v937_v55 = vsel %vm377_vm0, 1.0, %v875_v54 }
  0x2d   :  { %702 = vmatprep.mubr.bf16.mxu0 %v63_v13  ;;  %v91_v20 = vpack.c.bf16 %v80_v19, %v79_v18  ;;  %v92_v23 = vpack.c.bf16 %v82_v22, %v81_v21  ;;  %v84_v25 = vld [vmem:[#allocation5 + $0x68] sm:$0xff]  ;;  %v85_v27 = vld [vmem:[#allocation5 + $0x70] sm:$0xff]  ;;  %v86_v28 = vld [vmem:[#allocation5 + $0x78] sm:$0xff] }
  0x2e   :  { %710 = vmatprep.mubr.bf16.mxu1 %v67_v16  ;;  %v93_v26 = vpack.c.bf16 %v84_v25, %v83_v24  ;;  %v94_v29 = vpack.c.bf16 %v86_v28, %v85_v27  ;;  %v49_v30 = vld [vmem:[#allocation2 + $0x10] sm:$0xff]  ;;  %v50_v31 = vld [vmem:[#allocation2 + $0x18] sm:$0xff]  ;;  %v51_v34 = vld [vmem:[#allocation2 + $0x20] sm:$0xff] }
  0x2f   :  { %689 = vmatpush3.bf16.msra.mxu0 %v88_v5  ;;  %727 = vmatpush3.bf16.msra.mxu1 %v88_v5  ;;  %v57_v32 = vld [vmem:[#allocation2 + $0x50] sm:$0xff]  ;;  %v58_v33 = vld [vmem:[#allocation2 + $0x58] sm:$0xff]  ;;  %v52_v35 = vld [vmem:[#allocation2 + $0x28] sm:$0xff]  ;;  %v64_v38 = vpack.c.bf16 %v50_v31, %v49_v30 }
  0x30   :  { %690 = vmatprep.subr.bf16.mxu0 %v89_v8  ;;  %720 = vmatprep.subr.bf16.mxu1 %v89_v8  ;;  %v59_v36 = vld [vmem:[#allocation2 + $0x60] sm:$0xff]  ;;  %v60_v37 = vld [vmem:[#allocation2 + $0x68] sm:$0xff]  ;;  %v68_v39 = vpack.c.bf16 %v58_v33, %v57_v32  ;;  %v65_v40 = vpack.c.bf16 %v52_v35, %v51_v34  ;;  %v53_v42 = vld [vmem:[#allocation2 + $0x30] sm:$0xff] }
  0x31   :  { %v69_v41 = vpack.c.bf16 %v60_v37, %v59_v36  ;;  %v54_v43 = vld [vmem:[#allocation2 + $0x38] sm:$0xff]  ;;  %v61_v44 = vld [vmem:[#allocation2 + $0x70] sm:$0xff]  ;;  %v932_v50 = vld [vmem:[%s1096_s2] ss:$0 sm:$0xff]  ;;  %s876_s2 = smov [#allocation7]  }
  0x32   :  { %v62_v45 = vld [vmem:[#allocation2 + $0x78] sm:$0xff]  ;;  %v66_v46 = vpack.c.bf16 %v54_v43, %v53_v42  ;;  %s481_s15 = sshll.u32 %s876_s2, 4  ;;  %s482_s15 = int_to_ptr.vmem [resolvable:$true] %s481_s15 }
  0x33   :  { %691 = vmatpush3.bf16.msra.mxu0 %v89_v8  ;;  %728 = vmatpush3.bf16.msra.mxu1 %v89_v8  ;;  %v70_v47 = vpack.c.bf16 %v62_v45, %v61_v44  ;;  %s819_s16 = scalar_lea.vmem %s482_s15, 1024  ;;  %p824_p3 = scmp.lt.s32.totalorder %s482_s15, %s482_s15 }
  0x34   :  { %692 = vmatprep.subr.bf16.mxu0 %v90_v17  ;;  %721 = vmatprep.subr.bf16.mxu1 %v90_v17  ;;  %p820_p2 = scmp.ne.s32.totalorder %s482_s15, %s819_s16  ;;  %p825_p4 = scmp.lt.s32.totalorder %s819_s16, %s819_s16 }
  0x36   :  { %p826_p5 = por %p825_p4, %p824_p3 }
  0x37   :  { %693 = vmatpush3.bf16.msra.mxu0 %v90_v17  ;;  %729 = vmatpush3.bf16.msra.mxu1 %v90_v17 }
  0x38   :  { %694 = vmatprep.subr.bf16.mxu0 %v91_v20  ;;  %722 = vmatprep.subr.bf16.mxu1 %v91_v20  ;;  %p827_p6 = pnand %p826_p5, %p820_p2 }
  0x3b   :  { %695 = vmatpush3.bf16.msra.mxu0 %v91_v20  ;;  %730 = vmatpush3.bf16.msra.mxu1 %v91_v20 }
  0x3c   :  { %696 = vmatprep.subr.bf16.mxu0 %v92_v23  ;;  %723 = vmatprep.subr.bf16.mxu1 %v92_v23 }
  0x3f   :  { %697 = vmatpush3.bf16.msra.mxu0 %v92_v23  ;;  %731 = vmatpush3.bf16.msra.mxu1 %v92_v23 }
  0x40   :  { %698 = vmatprep.subr.bf16.mxu0 %v93_v26  ;;  %724 = vmatprep.subr.bf16.mxu1 %v93_v26 }
  0x43   :  { %699 = vmatpush3.bf16.msra.mxu0 %v93_v26  ;;  %732 = vmatpush3.bf16.msra.mxu1 %v93_v26 }
  0x44   :  { %700 = vmatprep.subr.bf16.mxu0 %v94_v29  ;;  %725 = vmatprep.subr.bf16.mxu1 %v94_v29 }
  0x47   :  { %701 = vmatpush3.bf16.msra.mxu0 %v94_v29  ;;  %733 = vmatpush3.bf16.msra.mxu1 %v94_v29 }
  0x4a   :  { %703 = vmatmul.mubr.bf16.vlgmr.msra.gmra.mrb[0].mxu0 %v64_v38  ;;  %711 = vmatmul.mubr.bf16.vlgmr.msra.gmra.mrb[0].mxu1 %v68_v39 }
  0x4b   :  { %706 = vmatprep.mubr.bf16.mxu0 %v65_v40  ;;  %714 = vmatprep.mubr.bf16.mxu1 %v69_v41 }
  0x52   :  { %707 = vmatmul.mubr.bf16.gmra.mrb[4].mxu0 %v66_v46  ;;  %715 = vmatmul.mubr.bf16.gmra.mrb[4].mxu1 %v70_v47 }
 0x11d   :  { %v704_v51 = vpop.f32.mrb[0].mxu0  ;;  %v712_v52 = vpop.f32.mrb[0].mxu1 }
 0x11e   :  { %v935_v53 = vadd.f32 %v704_v51, %v932_v50  ;;  %v940_v56 = vadd.f32 %v712_v52, %v932_v50  ;;  %v136_v57 = vpop.f32.mrb[1].mxu0  ;;  %v168_v58 = vpop.f32.mrb[1].mxu1 }
 0x11f   :  { %v943_v59 = vadd.f32 %v932_v50, %v136_v57  ;;  %v946_v60 = vadd.f32 %v932_v50, %v168_v58  ;;  %v705_v61 = vpop.f32.mrb[2].mxu0  ;;  %v713_v62 = vpop.f32.mrb[2].mxu1 }
 0x120   :  { %v949_v63 = vadd.f32 %v705_v61, %v932_v50  ;;  %v952_v0 = vadd.f32 %v713_v62, %v932_v50  ;;  %v139_v1 = vpop.f32.mrb[3].mxu0  ;;  %v171_v2 = vpop.f32.mrb[3].mxu1  ;;  %v382_v3 = vadd.f32 %v937_v55, %v935_v53  ;;  %v390_v4 = vadd.f32 %v937_v55, %v940_v56 }
 0x121   :  { %v959_v5 = vadd.f32 %v932_v50, %v139_v1  ;;  %v962_v6 = vadd.f32 %v932_v50, %v171_v2  ;;  %v209_v9 = vmul.f32 %v940_v56, %v940_v56  ;;  %v201_v10 = vmul.f32 %v935_v53, %v935_v53 }
 0x122   :  { %v383_v7 = vadd.f32 %v937_v55, %v949_v63  ;;  %v391_v8 = vadd.f32 %v937_v55, %v952_v0  ;;  %v380_v11 = vadd.f32 %v937_v55, %v943_v59  ;;  %v388_v12 = vadd.f32 %v937_v55, %v946_v60 }
 0x123   :  { %v381_v13 = vadd.f32 %v937_v55, %v959_v5  ;;  %v389_v14 = vadd.f32 %v937_v55, %v962_v6  ;;  %235 = vadd.xlane.f32.xlu0 %v209_v9  ;;  %219 = vadd.xlane.f32.xlu1 %v201_v10  ;;  %v202_v21 = vmul.f32 %v949_v63, %v949_v63 }
 0x124   :  { %v624_v15 = vpack.c.bf16 %v383_v7, %v382_v3  ;;  %v644_v16 = vpack.c.bf16 %v391_v8, %v390_v4  ;;  %v199_v22 = vmul.f32 %v943_v59, %v943_v59  ;;  %v210_v32 = vmul.f32 %v952_v0, %v952_v0 }
 0x125   :  { %v619_v17 = vpack.c.bf16 %v381_v13, %v380_v11  ;;  %v639_v18 = vpack.c.bf16 %v389_v14, %v388_v12  ;;  %v708_v19 = vpop.f32.mrb[4].mxu0  ;;  %v716_v20 = vpop.f32.mrb[4].mxu1  ;;  %v207_v41 = vmul.f32 %v946_v60, %v946_v60  ;;  %v208_v51 = vmul.f32 %v962_v6, %v962_v6 }
 0x126   :  { %663 = vst [vmem:[#allocation7 + $0x8] sm:$0xff] %v624_v15   ;;  %667 = vst [vmem:[#allocation7 + $0x28] sm:$0xff] %v644_v16   ;;  %v985_v23 = vadd.f32 %v708_v19, %v932_v50  ;;  %v152_v24 = vpop.f32.mrb[5].mxu0  ;;  %v988_v25 = vadd.f32 %v716_v20, %v932_v50  ;;  %v184_v26 = vpop.f32.mrb[5].mxu1 }
 0x127   :  { %620 = vst [vmem:[#allocation7] sm:$0xff] %v619_v17   ;;  %666 = vst [vmem:[#allocation7 + $0x20] sm:$0xff] %v639_v18   ;;  %v991_v27 = vadd.f32 %v932_v50, %v152_v24  ;;  %v709_v28 = vpop.f32.mrb[6].mxu0  ;;  %v994_v29 = vadd.f32 %v932_v50, %v184_v26  ;;  %v717_v30 = vpop.f32.mrb[6].mxu1  ;;  %221 = vadd.xlane.f32.xlu1 %v202_v21  ;;  %215 = vadd.xlane.f32.xlu0 %v199_v22 }
 0x128   :  { %v386_v31 = vadd.f32 %v937_v55, %v985_v23  ;;  %v1001_v33 = vadd.f32 %v709_v28, %v932_v50  ;;  %v155_v34 = vpop.f32.mrb[7].mxu0  ;;  %v187_v35 = vpop.f32.mrb[7].mxu1  ;;  %v394_v38 = vadd.f32 %v937_v55, %v988_v25  ;;  %v1011_v39 = vadd.f32 %v717_v30, %v932_v50 }
 0x129   :  { %v384_v36 = vadd.f32 %v937_v55, %v991_v27  ;;  %v1006_v37 = vadd.f32 %v932_v50, %v155_v34  ;;  %v392_v42 = vadd.f32 %v937_v55, %v994_v29  ;;  %v1020_v43 = vadd.f32 %v932_v50, %v187_v35 }
 0x12a   :  { %v387_v40 = vadd.f32 %v937_v55, %v1001_v33  ;;  %v395_v45 = vadd.f32 %v937_v55, %v1011_v39  ;;  %v200_v50 = vmul.f32 %v959_v5, %v959_v5  ;;  %v206_v54 = vmul.f32 %v1001_v33, %v1001_v33 }
 0x12b   :  { %v385_v44 = vadd.f32 %v937_v55, %v1006_v37  ;;  %237 = vadd.xlane.f32.xlu1 %v210_v32  ;;  %231 = vadd.xlane.f32.xlu0 %v207_v41  ;;  %v393_v47 = vadd.f32 %v937_v55, %v1020_v43  ;;  %v205_v55 = vmul.f32 %v985_v23, %v985_v23 }
 0x12c   :  { %v634_v46 = vpack.c.bf16 %v387_v40, %v386_v31  ;;  %v654_v49 = vpack.c.bf16 %v395_v45, %v394_v38  ;;  %v204_v57 = vmul.f32 %v1006_v37, %v1006_v37  ;;  %v203_v58 = vmul.f32 %v991_v27, %v991_v27 }
 0x12d   :  { %v629_v48 = vpack.c.bf16 %v385_v44, %v384_v36  ;;  %v649_v52 = vpack.c.bf16 %v393_v47, %v392_v42  ;;  %v212_v61 = vmul.f32 %v1020_v43, %v1020_v43  ;;  %v211_v62 = vmul.f32 %v994_v29, %v994_v29 }
 0x12e   :  { %665 = vst [vmem:[#allocation7 + $0x18] sm:$0xff] %v634_v46   ;;  %669 = vst [vmem:[#allocation7 + $0x38] sm:$0xff] %v654_v49   ;;  %v214_v1 = vmul.f32 %v1011_v39, %v1011_v39  ;;  %v213_v2 = vmul.f32 %v988_v25, %v988_v25 }
 0x12f   :  { %664 = vst [vmem:[#allocation7 + $0x10] sm:$0xff] %v629_v48   ;;  %233 = vadd.xlane.f32.xlu1 %v208_v51  ;;  %217 = vadd.xlane.f32.xlu0 %v200_v50  ;;  %668 = vst [vmem:[#allocation7 + $0x30] sm:$0xff] %v649_v52  }
 0x133   :  { %229 = vadd.xlane.f32.xlu1 %v206_v54  ;;  %227 = vadd.xlane.f32.xlu0 %v205_v55 }
 0x137   :  { %225 = vadd.xlane.f32.xlu1 %v204_v57  ;;  %223 = vadd.xlane.f32.xlu0 %v203_v58 }
 0x13b   :  { %241 = vadd.xlane.f32.xlu1 %v212_v61  ;;  %239 = vadd.xlane.f32.xlu0 %v211_v62 }
 0x13f   :  { %245 = vadd.xlane.f32.xlu1 %v214_v1  ;;  %243 = vadd.xlane.f32.xlu0 %v213_v2 }
 0x140   :  { %830 = shalt.err (!%p827_p6)
}
 0x141   :  { %s831_s19 = scalar_lea.hbm %s1097_s3, 1024 }
 0x142   :  { %p832_p7 = scmp.ne.s32.totalorder %s1097_s3, %s831_s19  ;;  %p835_p8 = scmp.lt.u32.totalorder %s831_s19, %s1097_s3 }
 0x144   :  { %p837_p9 = pnand %p835_p8, %p832_p7 }
 0x146   :  { %840 = shalt.err (!%p837_p9)
}
 0x147   :  { %s877_s24 = smov 64   ;;  %s878_s25 = smov 4  }
 0x148   :  { %487 = dma.vmem_to_hbm [thread:$0]  %s482_s15, 1024, %s1097_s3, [#allocation4], %s877_s24, %s877_s24, %s878_s25  }
 0x149   :  { %s879_s3 = smov [#allocation8]  }
 0x14a   :  { %s493_s28 = sshll.u32 %s879_s3, 4  ;;  %s494_s28 = int_to_ptr.vmem [resolvable:$true] %s493_s28 }
 0x14b   :  { %s841_s29 = scalar_lea.vmem %s494_s28, 1024  ;;  %p846_p11 = scmp.lt.s32.totalorder %s494_s28, %s494_s28 }
 0x14c   :  { %p842_p10 = scmp.ne.s32.totalorder %s494_s28, %s841_s29  ;;  %p847_p12 = scmp.lt.s32.totalorder %s841_s29, %s841_s29 }
 0x14e   :  { %p848_p13 = por %p847_p12, %p846_p11 }
 0x150   :  { %p849_p0 = pnand %p848_p13, %p842_p10 }
 0x1b0   :  { %v236_v3 = vpop.xlane.xlu0 %235  ;;  %v220_v4 = vpop.xlane.xlu1 %219 }
 0x1b1   :  { %v249_v7 = vmax.f32 %v220_v4, 1e-24  ;;  %v257_v10 = vmax.f32 %v236_v3, 1e-24 }
 0x1b3   :  { %743 = vrsqrt.f32 %v249_v7 }
 0x1b4   :  { %v222_v8 = vpop.xlane.xlu1 %221  ;;  %v216_v9 = vpop.xlane.xlu0 %215 }
 0x1b5   :  { %v250_v11 = vmax.f32 %v222_v8, 1e-24  ;;  %v247_v16 = vmax.f32 %v216_v9, 1e-24 }
 0x1b7   :  { %745 = vrsqrt.f32 %v250_v11 }
 0x1b8   :  { %v238_v12 = vpop.xlane.xlu1 %237  ;;  %v232_v13 = vpop.xlane.xlu0 %231  ;;  %747 = vrsqrt.f32 %v257_v10 }
 0x1b9   :  { %v258_v14 = vmax.f32 %v238_v12, 1e-24  ;;  %v255_v15 = vmax.f32 %v232_v13, 1e-24 }
 0x1bb   :  { %749 = vrsqrt.f32 %v258_v14 }
 0x1bc   :  { %v234_v17 = vpop.xlane.xlu1 %233  ;;  %v218_v18 = vpop.xlane.xlu0 %217  ;;  %751 = vrsqrt.f32 %v255_v15 }
 0x1bd   :  { %v256_v19 = vmax.f32 %v234_v17, 1e-24  ;;  %v248_v20 = vmax.f32 %v218_v18, 1e-24  ;;  %753 = vrsqrt.f32 %v247_v16  ;;  %v744_v21 = vpop.eup %743 }
 0x1be   :  { %v281_v31 = vmul.f32 %v744_v21, %v935_v53 }
 0x1bf   :  { %755 = vrsqrt.f32 %v256_v19 }
 0x1c0   :  { %757 = vrsqrt.f32 %v248_v20  ;;  %v230_v22 = vpop.xlane.xlu1 %229  ;;  %v228_v24 = vpop.xlane.xlu0 %227 }
 0x1c1   :  { %v746_v26 = vpop.eup %745  ;;  %v254_v28 = vmax.f32 %v230_v22, 1e-24  ;;  %v253_v30 = vmax.f32 %v228_v24, 1e-24 }
 0x1c2   :  { %v282_v32 = vmul.f32 %v746_v26, %v949_v63  ;;  %v748_v34 = vpop.eup %747 }
 0x1c3   :  { %759 = vrsqrt.f32 %v254_v28  ;;  %v289_v44 = vmul.f32 %v748_v34, %v940_v56 }
 0x1c4   :  { %v584_v35 = vpack.c.bf16 %v282_v32, %v281_v31  ;;  %761 = vrsqrt.f32 %v253_v30  ;;  %v226_v36 = vpop.xlane.xlu1 %225  ;;  %v224_v38 = vpop.xlane.xlu0 %223 }
 0x1c5   :  { %v750_v40 = vpop.eup %749  ;;  %v252_v41 = vmax.f32 %v226_v36, 1e-24  ;;  %v251_v42 = vmax.f32 %v224_v38, 1e-24 }
 0x1c6   :  { %656 = vst [vmem:[#allocation8 + $0x8] sm:$0xff] %v584_v35   ;;  %v290_v45 = vmul.f32 %v750_v40, %v952_v0  ;;  %v752_v46 = vpop.eup %751 }
 0x1c7   :  { %763 = vrsqrt.f32 %v252_v41  ;;  %v754_v47 = vpop.eup %753  ;;  %v287_v54 = vmul.f32 %v752_v46, %v946_v60 }
 0x1c8   :  { %v604_v53 = vpack.c.bf16 %v290_v45, %v289_v44  ;;  %765 = vrsqrt.f32 %v251_v42  ;;  %v242_v63 = vpop.xlane.xlu1 %241  ;;  %v240_v48 = vpop.xlane.xlu0 %239  ;;  %v279_v56 = vmul.f32 %v754_v47, %v943_v59 }
 0x1c9   :  { %v756_v49 = vpop.eup %755  ;;  %v260_v51 = vmax.f32 %v242_v63, 1e-24  ;;  %v259_v50 = vmax.f32 %v240_v48, 1e-24 }
 0x1ca   :  { %v758_v52 = vpop.eup %757  ;;  %660 = vst [vmem:[#allocation8 + $0x28] sm:$0xff] %v604_v53   ;;  %v288_v55 = vmul.f32 %v756_v49, %v962_v6 }
 0x1cb   :  { %v280_v0 = vmul.f32 %v758_v52, %v959_v5  ;;  %767 = vrsqrt.f32 %v260_v51 }
 0x1cc   :  { %v599_v57 = vpack.c.bf16 %v288_v55, %v287_v54  ;;  %769 = vrsqrt.f32 %v259_v50  ;;  %v246_v58 = vpop.xlane.xlu1 %245  ;;  %v244_v61 = vpop.xlane.xlu0 %243 }
 0x1cd   :  { %v760_v62 = vpop.eup %759  ;;  %v579_v1 = vpack.c.bf16 %v280_v0, %v279_v56  ;;  %v262_v2 = vmax.f32 %v246_v58, 1e-24  ;;  %v261_v3 = vmax.f32 %v244_v61, 1e-24 }
 0x1ce   :  { %v762_v4 = vpop.eup %761  ;;  %659 = vst [vmem:[#allocation8 + $0x20] sm:$0xff] %v599_v57   ;;  %v286_v7 = vmul.f32 %v760_v62, %v1001_v33 }
 0x1cf   :  { %580 = vst [vmem:[#allocation8] sm:$0xff] %v579_v1   ;;  %v285_v60 = vmul.f32 %v762_v4, %v985_v23  ;;  %771 = vrsqrt.f32 %v262_v2 }
 0x1d0   :  { %773 = vrsqrt.f32 %v261_v3 }
 0x1d1   :  { %v764_v59 = vpop.eup %763  ;;  %v594_v5 = vpack.c.bf16 %v286_v7, %v285_v60 }
 0x1d2   :  { %v766_v6 = vpop.eup %765  ;;  %v284_v8 = vmul.f32 %v764_v59, %v1006_v37 }
 0x1d3   :  { %658 = vst [vmem:[#allocation8 + $0x18] sm:$0xff] %v594_v5   ;;  %v283_v9 = vmul.f32 %v766_v6, %v991_v27 }
 0x1d5   :  { %v768_v10 = vpop.eup %767  ;;  %v589_v11 = vpack.c.bf16 %v284_v8, %v283_v9 }
 0x1d6   :  { %v770_v12 = vpop.eup %769  ;;  %v292_v13 = vmul.f32 %v768_v10, %v1020_v43 }
 0x1d7   :  { %657 = vst [vmem:[#allocation8 + $0x10] sm:$0xff] %v589_v11   ;;  %v291_v33 = vmul.f32 %v770_v12, %v994_v29 }
 0x1d9   :  { %v772_v14 = vpop.eup %771  ;;  %v609_v23 = vpack.c.bf16 %v292_v13, %v291_v33 }
 0x1da   :  { %v774_v15 = vpop.eup %773  ;;  %v294_v16 = vmul.f32 %v772_v14, %v1011_v39 }
 0x1db   :  { %661 = vst [vmem:[#allocation8 + $0x30] sm:$0xff] %v609_v23   ;;  %v293_v37 = vmul.f32 %v774_v15, %v988_v25 }
 0x1dd   :  { %v614_v17 = vpack.c.bf16 %v294_v16, %v293_v37 }
 0x1df   :  { %662 = vst [vmem:[#allocation8 + $0x38] sm:$0xff] %v614_v17  }
 0x1e0   :  { %852 = shalt.err (!%p849_p0)
}
 0x1e1   :  { %s853_s6 = scalar_lea.hbm %s1098_s4, 1024 }
 0x1e2   :  { %p854_p1 = scmp.ne.s32.totalorder %s1098_s4, %s853_s6  ;;  %p857_p2 = scmp.lt.u32.totalorder %s853_s6, %s1098_s4 }
 0x1e4   :  { %p859_p3 = pnand %p857_p2, %p854_p1 }
 0x1e6   :  { %862 = shalt.err (!%p859_p3)
}
 0x1e7   :  { %499 = dma.vmem_to_hbm [thread:$0]  %s494_s28, 1024, %s1098_s4, [#allocation9], %s877_s24, %s877_s24, %s878_s25  }
 0x1e8   :  { %867 = dma.done.wait [#allocation4], 1024  }
 0x1e9   :  { %868 = vsyncadd [#allocation4], 4294966272 }
 0x1ea   :  { %869 = dma.done.wait [#allocation9], 1024  }
 0x1eb   :  { %870 = vsyncadd [#allocation9], 4294966272 }
 0x1ec   :  { %506 = vsyncpa [#allocation3], 1 }
 0x1ed   :  { %507 = vsyncpa [#allocation6], 1 }
 0x1ee   :  { %508 = vsyncpa [#allocation4], 1 }
 0x1ef   :  { %509 = vsyncpa [#allocation9], 1 }

</bundles_post_ra>
